<compile_context>
chip_gen: v6e
topology: v6e:2x2x1
jax: 0.10.0
libtpu: 0.0.40
codegen_flags: <defaults>
</compile_context>

<pallas_src>
import jax
import jax.numpy as jnp
from jax.experimental import pallas as pl
from jax.experimental.pallas import tpu as pltpu

_MIB = 1024 * 1024


def _hw_budgets(block_target_override=None):
    """Generation-aware VMEM budgets."""
    vmem_cap = 64 * _MIB
    try:
        vmem_cap = int(pltpu.get_tpu_info().vmem_capacity_bytes)
    except Exception:
        pass
    if vmem_cap >= 100 * _MIB:            # v5e / v6e: 128 MiB VMEM per TensorCore
        budgets = {
            "vmem_limit": 96 * _MIB,
            "single_pass_budget": 64 * _MIB,   # cap on resident in+out+f32-temp footprint
            "block_target": 6 * _MIB,          # per-block (lane-padded, f32) target
        }
    else:                                  # v7x-class: 64 MiB physical -> stay conservative
        budgets = {
            "vmem_limit": 44 * _MIB,
            "single_pass_budget": 24 * _MIB,
            "block_target": 3 * _MIB,
        }
    if block_target_override is not None:
        budgets["block_target"] = int(block_target_override)
    return budgets


def _sublane_step(dtype):
    """Row-tile granularity: 8 for 4-byte, 16 for 2-byte, 32 for 1-byte dtypes (sublane packing)."""
    itemsize = jnp.dtype(dtype).itemsize
    return 8 * max(1, 4 // max(itemsize, 1))


def _round_up(x, m):
    return -(-x // m) * m


def _pick_row_tile(rows, row_bytes, target_bytes, step):
    """Pick a row tile (multiple of `step`, tile*row_bytes <= ~target_bytes).

    Returns (tile, padded_rows). padded_rows == rows unless zero-padding is needed so
    that the tile divides the row count (preferred over a whole-array block for awkward N).
    A full-extent row block (tile == rows) is always legal regardless of divisibility.
    """
    cap = max(step, (target_bytes // max(row_bytes, 1)) // step * step)
    if rows <= cap:
        return rows, rows                       # whole row extent in one block
    best = None
    t = step
    while t <= cap:
        if rows % t == 0:
            best = t
        t += step
    if best is not None:
        return best, rows                       # exact divisor: no padding needed
    tile = cap
    return tile, _round_up(rows, tile)          # pad rows (zero rows are harmless here)


# ---------------- resident single-pass (small arrays): 2x HBM traffic instead of 3x ----------------
def _single_pass_kernel(x_ref, o_ref):
    xf = x_ref[...].astype(jnp.float32)
    sq = jnp.sum(xf * xf, axis=1, keepdims=True)        # (N, 1) squared row norms
    # NOTE: no eps clamp -- matches torch semantics (all-zero input -> inf/nan).
    inv = 1.0 / jnp.sqrt(jnp.max(sq))
    # Re-read x_ref for the store so the f32 copy used by the reduction need not stay live
    # (VMEM reloads are cheap; kernel is DMA-bound).
    o_ref[...] = (x_ref[...].astype(jnp.float32) * inv).astype(o_ref.dtype)


def _escale_single_pass(x, vmem_limit):
    n, d = x.shape
    return pl.pallas_call(
        _single_pass_kernel,
        out_shape=jax.ShapeDtypeStruct((n, d), x.dtype),
        grid_spec=pltpu.PrefetchScalarGridSpec(
            num_scalar_prefetch=0,
            grid=(1,),
            in_specs=[pl.BlockSpec((n, d), lambda i: (0, 0))],
            out_specs=pl.BlockSpec((n, d), lambda i: (0, 0)),
        ),
        compiler_params=pltpu.CompilerParams(
            dimension_semantics=("arbitrary",),
            vmem_limit_bytes=vmem_limit),
    )(x)


# ---------------- pass 2 kernel: lane-dense multiply by the precomputed reciprocal ----------------
def _scale_kernel(inv_ref, x_ref, o_ref):
    inv = inv_ref[0, 0]
    o_ref[...] = (x_ref[...].astype(jnp.float32) * inv).astype(o_ref.dtype)


def _escale_two_pass(x, budgets):
    n, d = x.shape
    step = _sublane_step(x.dtype)
    padded_d = _round_up(d, 128)
    block_target = budgets["block_target"]
    vmem_limit = budgets["vmem_limit"]

    # ---------------- pass 1: max squared row norm -> per-partition scalar partials ----------------
    row_bytes_p1 = padded_d * 4                          # lane-padded, f32-upcast footprint per row
    tm, n_pad1 = _pick_row_tile(n, row_bytes_p1, block_target, step)
    x1 = x if n_pad1 == n else jnp.pad(x, ((0, n_pad1 - n), (0, 0)))  # zero rows: sq == 0, harmless
    n_tiles = n_pad1 // tm
    # Leading 'parallel' axis lets v7x's two TensorCores each scan half the rows;
    # on 1-TC chips it is just a harmless serial loop.
    n_parts = 2 if (n_tiles % 2 == 0 and n_tiles >= 2) else 1
    tiles_per_part = n_tiles // n_parts

    def _max_sq_kernel(x_ref, part_ref):
        i = pl.program_id(1)

        @pl.when(i == 0)
        def _():
            part_ref[0, 0] = 0.0                         # squared norms are >= 0

        xf = x_ref[...].astype(jnp.float32)
        sq = jnp.sum(xf * xf, axis=1, keepdims=True)     # (tm, 1)
        # Per-step cross-lane collapse runs on the XLU (plenty of slack in this HBM-bound
        # kernel); accumulator is a single SMEM scalar instead of a (tm, 1) VMEM buffer.
        part_ref[0, 0] = jnp.maximum(part_ref[0, 0], jnp.max(sq))

    partials = pl.pallas_call(
        _max_sq_kernel,
        out_shape=jax.ShapeDtypeStruct((n_parts, 1), jnp.float32),
        grid_spec=pltpu.PrefetchScalarGridSpec(
            num_scalar_prefetch=0,
            grid=(n_parts, tiles_per_part),
            in_specs=[pl.BlockSpec((tm, d),
                                   lambda c, i: (c * tiles_per_part + i, 0))],
            out_specs=pl.BlockSpec((1, 1), lambda c, i: (c, 0),
                                   memory_space=pltpu.SMEM),
        ),
        compiler_params=pltpu.CompilerParams(
            dimension_semantics=("parallel", "arbitrary"),
            vmem_limit_bytes=vmem_limit),
    )(x1)

    # Combine partial maxima and form the scalar reciprocal once (tiny XLA op between calls).
    max_sq = jnp.max(partials)
    inv_scale = (1.0 / jnp.sqrt(max_sq)).reshape(1, 1).astype(jnp.float32)

    # ---------------- pass 2: flatten to a lane-dense (rows, W) view when possible ----------------
    total = n * d
    width = None
    for w in (1024, 512, 256, 128):
        if total % w == 0:
            width = w
            break
    if width is None:
        x_flat, rows, width, padded_w = x, n, d, padded_d   # keep original layout
    else:
        rows = total // width
        x_flat = x.reshape(rows, width)
        padded_w = width

    row_bytes_p2 = padded_w * 4
    tr, rows_pad = _pick_row_tile(rows, row_bytes_p2, block_target, step)
    xf2 = x_flat if rows_pad == rows else jnp.pad(x_flat, ((0, rows_pad - rows), (0, 0)))

    out_flat = pl.pallas_call(
        _scale_kernel,
        out_shape=jax.ShapeDtypeStruct((rows_pad, width), x.dtype),
        grid_spec=pltpu.PrefetchScalarGridSpec(
            num_scalar_prefetch=0,
            grid=(rows_pad // tr,),
            in_specs=[
                pl.BlockSpec((1, 1), lambda i: (0, 0), memory_space=pltpu.SMEM),
                pl.BlockSpec((tr, width), lambda i: (i, 0)),
            ],
            out_specs=pl.BlockSpec((tr, width), lambda i: (i, 0)),
        ),
        compiler_params=pltpu.CompilerParams(
            dimension_semantics=("parallel",),
            vmem_limit_bytes=vmem_limit),
    )(inv_scale, xf2)

    if rows_pad != rows:
        out_flat = out_flat[:rows]
    return out_flat.reshape(n, d)


def escale_object(x, *, single_pass=None, block_target_bytes=None):
    """Pallas equivalent of escaleObject.forward: x / max_i ||x[i, :]||_2.

    Note: like the torch module, an all-zero input divides by zero (inf/nan output).
    """
    assert x.ndim == 2
    budgets = _hw_budgets(block_target_bytes)
    n, d = x.shape
    itemsize = jnp.dtype(x.dtype).itemsize
    padded_d = _round_up(d, 128)
    n_pad = _round_up(max(n, 1), _sublane_step(x.dtype))
    # Lane-padded resident footprint: input + output (native dtype) + one f32 temp.
    resident_bytes = n_pad * padded_d * (2 * itemsize + 4)
    if single_pass is None:
        single_pass = resident_bytes <= budgets["single_pass_budget"]
    if single_pass:
        return _escale_single_pass(x, budgets["vmem_limit"])
    return _escale_two_pass(x, budgets)


if __name__ == "__main__":
    key = jax.random.PRNGKey(0)
    k1, k2, k3 = jax.random.split(key, 3)

    # Small point cloud: 256 points, 16-dim vectors (norm over dim=1, like the module).
    x = jax.random.normal(k1, (256, 16), dtype=jnp.float32)
    ref = x / jnp.max(jnp.linalg.norm(x, axis=1))
    out_resident = jax.block_until_ready(escale_object(x))                      # resident fast path
    out_streamed = jax.block_until_ready(escale_object(x, single_pass=False))   # two-pass path
    for out in (out_resident, out_streamed):
        assert out.shape == x.shape and out.dtype == x.dtype
        assert jnp.allclose(out, ref, atol=1e-5, rtol=1e-5)

    # Awkward width: exercises the non-flattenable / 128-lane-padded pass-2 layout.
    y = jax.random.normal(k2, (200, 48), dtype=jnp.float32)
    ref_y = y / jnp.max(jnp.linalg.norm(y, axis=1))
    out_y = jax.block_until_ready(escale_object(y, single_pass=False))
    assert jnp.allclose(out_y, ref_y, atol=1e-5, rtol=1e-5)

    # Awkward row count + tiny forced block target: exercises row padding, multi-tile
    # streaming, and the two-partition (megacore-friendly) reduction split.
    z = jax.random.normal(k3, (250, 16), dtype=jnp.float32)
    ref_z = z / jnp.max(jnp.linalg.norm(z, axis=1))
    out_z = jax.block_until_ready(
        escale_object(z, single_pass=False, block_target_bytes=64 * 1024))
    assert jnp.allclose(out_z, ref_z, atol=1e-5, rtol=1e-5)

    print("KERNEL_OK")
</pallas_src>

<mosaic_0001>
module attributes {stable_mosaic.version = 11 : i64} {
  func.func @_single_pass_kernel(%arg0: i32, %arg1: memref<256x16xf32, #tpu.memory_space<vmem>>, %arg2: memref<256x16xf32, #tpu.memory_space<vmem>>) attributes {dimension_semantics = [#tpu.dimension_semantics<arbitrary>], iteration_bounds = array<i64: 1>, scalar_prefetch = 0 : i64, scratch_operands = 0 : i64, tpu.core_type = #tpu.core_type<tc>, window_params = [{pipeline_mode = #tpu.pipeline_mode<synchronous>, transform_indices = @transform_0, window_bounds = array<i64: 256, 16>}, {pipeline_mode = #tpu.pipeline_mode<synchronous>, transform_indices = @transform_1, window_bounds = array<i64: 256, 16>}]} {
    %c0 = arith.constant 0 : index
    %c0_0 = arith.constant 0 : index
    %0 = vector.load %arg1[%c0, %c0_0] : memref<256x16xf32, #tpu.memory_space<vmem>>, vector<256x16xf32>
    %1 = arith.mulf %0, %0 : vector<256x16xf32>
    %cst = arith.constant dense<0.000000e+00> : vector<256xf32>
    %2 = vector.multi_reduction <add>, %1, %cst [1] : vector<256x16xf32> to vector<256xf32>
    %3 = vector.shape_cast %2 : vector<256xf32> to vector<256x1xf32>
    %4 = vector.shape_cast %3 : vector<256x1xf32> to vector<1x256x1xf32>
    %cst_1 = arith.constant dense<0xFF800000> : vector<1xf32>
    %5 = vector.multi_reduction <maximumf>, %4, %cst_1 [1, 2] : vector<1x256x1xf32> to vector<1xf32>
    %6 = vector.shape_cast %5 : vector<1xf32> to vector<1x1x1xf32>
    %7 = vector.extract %6[0, 0, 0] : f32 from vector<1x1x1xf32>
    %8 = math.sqrt %7 : f32
    %cst_2 = arith.constant 1.000000e+00 : f32
    %9 = arith.divf %cst_2, %8 : f32
    %c0_3 = arith.constant 0 : index
    %c0_4 = arith.constant 0 : index
    %10 = vector.load %arg1[%c0_3, %c0_4] : memref<256x16xf32, #tpu.memory_space<vmem>>, vector<256x16xf32>
    %11 = vector.broadcast %9 : f32 to vector<256x16xf32>
    %12 = arith.mulf %10, %11 : vector<256x16xf32>
    %c0_5 = arith.constant 0 : index
    %c0_6 = arith.constant 0 : index
    %13 = vector.load %arg2[%c0_5, %c0_6] : memref<256x16xf32, #tpu.memory_space<vmem>>, vector<256x16xf32>
    tpu.vector_store %arg2[%c0_5, %c0_6], %12 {strides = array<i32>} : memref<256x16xf32, #tpu.memory_space<vmem>>, vector<256x16xf32>,
    return
  }
  func.func @transform_0(%arg0: i32) -> (i32, i32) {
    %c0_i32 = arith.constant 0 : i32
    %c0_i32_0 = arith.constant 0 : i32
    %c0_i32_1 = arith.constant 0 : i32
    return %c0_i32, %c0_i32_0 : i32, i32
  }
  func.func @transform_1(%arg0: i32) -> (i32, i32) {
    %c0_i32 = arith.constant 0 : i32
    %c0_i32_0 = arith.constant 0 : i32
    %c0_i32_1 = arith.constant 0 : i32
    return %c0_i32, %c0_i32_0 : i32, i32
  }
}

</mosaic_0001>

<bundles_post_ra>
// kernel: tpu_custom_call.1
= control target key start
LH: loop header
LB: loop body
LE: loop exit
PB: predicated region body
PF: predicated region fallthrough
CT: control target
= control target key end

     0   :  { %vm72_vm0 = vcmask 130048   ;;  %s724_s0 = inlined_call_operand.vmem [shape: f32[256,16], index: 0, kind: input, shape index: {}]   ;;  %s725_s1 = inlined_call_operand.vmem [shape: f32[256,16], index: 1, kind: output, shape index: {}]  }
   0x1   :  { %v311_v0 = vld [vmem:[%s724_s0 + $0x10] sm:$0xff]  ;;  %v316_v1 = vld [vmem:[%s724_s0] sm:$0xff]  ;;  %v321_v2 = vld [vmem:[%s724_s0 + $0x18] sm:$0xff] }
   0x2   :  { %v42_v3 = vmul.f32 %v311_v0, %v311_v0  ;;  %v40_v4 = vmul.f32 %v316_v1, %v316_v1  ;;  %v43_v5 = vmul.f32 %v321_v2, %v321_v2  ;;  %v332_v6 = vld [vmem:[%s724_s0 + $0x8] sm:$0xff]  ;;  %v344_v9 = vld [vmem:[%s724_s0 + $0x20] sm:$0xff]  ;;  %v357_v16 = vld [vmem:[%s724_s0 + $0x38] sm:$0xff] }
   0x3   :  { %v41_v7 = vmul.f32 %v332_v6, %v332_v6  ;;  %v339_v8 = vld [vmem:[%s724_s0 + $0x28] sm:$0xff]  ;;  %v44_v15 = vmul.f32 %v344_v9, %v344_v9  ;;  %v362_v17 = vld [vmem:[%s724_s0 + $0x30] sm:$0xff]  ;;  %v47_v20 = vmul.f32 %v357_v16, %v357_v16  ;;  %v378_v23 = vld [vmem:[%s724_s0 + $0x40] sm:$0xff] }
   0x4   :  { %v79_v10 = vsel %vm72_vm0, %v42_v3, 0.0  ;;  %v73_v11 = vsel %vm72_vm0, %v40_v4, 0.0  ;;  %v82_v12 = vsel %vm72_vm0, %v43_v5, 0.0  ;;  %v45_v14 = vmul.f32 %v339_v8, %v339_v8  ;;  %v373_v22 = vld [vmem:[%s724_s0 + $0x48] sm:$0xff]  ;;  %v389_v28 = vld [vmem:[%s724_s0 + $0x58] sm:$0xff]  ;;  %v394_v29 = vld [vmem:[%s724_s0 + $0x50] sm:$0xff] }
   0x5   :  { %80 = vadd.xlane.f32.xlu1 %v79_v10  ;;  %74 = vadd.xlane.f32.xlu0 %v73_v11  ;;  %v76_v13 = vsel %vm72_vm0, %v41_v7, 0.0  ;;  %v85_v19 = vsel %vm72_vm0, %v44_v15, 0.0  ;;  %v46_v21 = vmul.f32 %v362_v17, %v362_v17  ;;  %v94_v24 = vsel %vm72_vm0, %v47_v20, 0.0  ;;  %v405_v34 = vld [vmem:[%s724_s0 + $0x68] sm:$0xff]  ;;  %v410_v35 = vld [vmem:[%s724_s0 + $0x60] sm:$0xff]  ;;  %v421_v40 = vld [vmem:[%s724_s0 + $0x78] sm:$0xff] }
   0x6   :  { %v88_v18 = vsel %vm72_vm0, %v45_v14, 0.0  ;;  %v49_v26 = vmul.f32 %v373_v22, %v373_v22  ;;  %v48_v27 = vmul.f32 %v378_v23, %v378_v23  ;;  %v51_v32 = vmul.f32 %v389_v28, %v389_v28  ;;  %v426_v41 = vld [vmem:[%s724_s0 + $0x70] sm:$0xff]  ;;  %v437_v46 = vld [vmem:[%s724_s0 + $0x88] sm:$0xff]  ;;  %v442_v47 = vld [vmem:[%s724_s0 + $0x80] sm:$0xff] }
   0x7   :  { %v91_v25 = vsel %vm72_vm0, %v46_v21, 0.0  ;;  %v50_v33 = vmul.f32 %v394_v29, %v394_v29  ;;  %v53_v38 = vmul.f32 %v405_v34, %v405_v34  ;;  %v52_v39 = vmul.f32 %v410_v35, %v410_v35  ;;  %v453_v52 = vld [vmem:[%s724_s0 + $0x98] sm:$0xff]  ;;  %v458_v53 = vld [vmem:[%s724_s0 + $0x90] sm:$0xff]  ;;  %v469_v58 = vld [vmem:[%s724_s0 + $0xa8] sm:$0xff] }
   0x8   :  { %v100_v30 = vsel %vm72_vm0, %v49_v26, 0.0  ;;  %v97_v31 = vsel %vm72_vm0, %v48_v27, 0.0  ;;  %v106_v36 = vsel %vm72_vm0, %v51_v32, 0.0  ;;  %v55_v44 = vmul.f32 %v421_v40, %v421_v40  ;;  %738 = vst [vmem:[#allocation2_spill] sm:$0xff] %v469_v58  ;;  %v474_v59 = vld [vmem:[%s724_s0 + $0xa0] sm:$0xff]  ;;  %v485_v3 = vld [vmem:[%s724_s0 + $0xb8] sm:$0xff] }
   0x9   :  { %83 = vadd.xlane.f32.xlu1 %v82_v12  ;;  %77 = vadd.xlane.f32.xlu0 %v76_v13  ;;  %v103_v37 = vsel %vm72_vm0, %v50_v33, 0.0  ;;  %v112_v42 = vsel %vm72_vm0, %v53_v38, 0.0  ;;  %v109_v43 = vsel %vm72_vm0, %v52_v39, 0.0  ;;  %v54_v45 = vmul.f32 %v426_v41, %v426_v41  ;;  %739 = vst [vmem:[#allocation3_spill] sm:$0xff] %v474_v59  ;;  %740 = vst [vmem:[#allocation4_spill] sm:$0xff] %v485_v3  ;;  %v490_v4 = vld [vmem:[%s724_s0 + $0xb0] sm:$0xff] }
   0xa   :  { %v118_v48 = vsel %vm72_vm0, %v55_v44, 0.0  ;;  %v57_v50 = vmul.f32 %v437_v46, %v437_v46  ;;  %v56_v51 = vmul.f32 %v442_v47, %v442_v47  ;;  %v59_v56 = vmul.f32 %v453_v52, %v453_v52  ;;  %741 = vst [vmem:[#allocation5_spill] sm:$0xff] %v490_v4  ;;  %v501_v12 = vld [vmem:[%s724_s0 + $0xc8] sm:$0xff]  ;;  %v506_v13 = vld [vmem:[%s724_s0 + $0xc0] sm:$0xff]  ;;  %v517_v20 = vld [vmem:[%s724_s0 + $0xd8] sm:$0xff] }
   0xb   :  { %v115_v49 = vsel %vm72_vm0, %v54_v45, 0.0  ;;  %v58_v57 = vmul.f32 %v458_v53, %v458_v53  ;;  %v61_v62 = vmul.f32 %v469_v58, %v469_v58  ;;  %v60_v63 = vmul.f32 %v474_v59, %v474_v59  ;;  %742 = vst [vmem:[#allocation6_spill] sm:$0xff] %v501_v12  ;;  %743 = vst [vmem:[#allocation7_spill] sm:$0xff] %v506_v13  ;;  %v522_v21 = vld [vmem:[%s724_s0 + $0xd0] sm:$0xff]  ;;  %v549_v38 = vld [vmem:[%s724_s0 + $0xf8] sm:$0xff] }
   0xc   :  { %v124_v54 = vsel %vm72_vm0, %v57_v50, 0.0  ;;  %v121_v55 = vsel %vm72_vm0, %v56_v51, 0.0  ;;  %v130_v60 = vsel %vm72_vm0, %v59_v56, 0.0  ;;  %v63_v10 = vmul.f32 %v485_v3, %v485_v3  ;;  %744 = vst [vmem:[#allocation8_spill] sm:$0xff] %v517_v20  ;;  %745 = vst [vmem:[#allocation9_spill] sm:$0xff] %v522_v21  ;;  %v554_v39 = vld [vmem:[%s724_s0 + $0xf0] sm:$0xff] }
   0xd   :  { %89 = vadd.xlane.f32.xlu1 %v88_v18  ;;  %86 = vadd.xlane.f32.xlu0 %v85_v19  ;;  %v127_v61 = vsel %vm72_vm0, %v58_v57, 0.0  ;;  %v136_v5 = vsel %vm72_vm0, %v61_v62, 0.0  ;;  %v133_v7 = vsel %vm72_vm0, %v60_v63, 0.0  ;;  %v62_v11 = vmul.f32 %v490_v4, %v490_v4  ;;  %748 = vst [vmem:[#allocation12_spill] sm:$0xff] %v549_v38  ;;  %749 = vst [vmem:[#allocation13_spill] sm:$0xff] %v554_v39 }
   0xe   :  { %v142_v14 = vsel %vm72_vm0, %v63_v10, 0.0  ;;  %v65_v18 = vmul.f32 %v501_v12, %v501_v12  ;;  %v64_v19 = vmul.f32 %v506_v13, %v506_v13  ;;  %v67_v26 = vmul.f32 %v517_v20, %v517_v20 }
   0xf   :  { %v139_v15 = vsel %vm72_vm0, %v62_v11, 0.0  ;;  %v66_v27 = vmul.f32 %v522_v21, %v522_v21  ;;  %v71_v44 = vmul.f32 %v549_v38, %v549_v38  ;;  %v70_v45 = vmul.f32 %v554_v39, %v554_v39 }
  0x10   :  { %v154_v32 = vsel %vm72_vm0, %v67_v26, 0.0 }
  0x11   :  { %95 = vadd.xlane.f32.xlu1 %v94_v24  ;;  %92 = vadd.xlane.f32.xlu0 %v91_v25  ;;  %v148_v24 = vsel %vm72_vm0, %v65_v18, 0.0  ;;  %v145_v25 = vsel %vm72_vm0, %v64_v19, 0.0  ;;  %v151_v33 = vsel %vm72_vm0, %v66_v27, 0.0 }
  0x15   :  { %101 = vadd.xlane.f32.xlu1 %v100_v30  ;;  %98 = vadd.xlane.f32.xlu0 %v97_v31  ;;  %v533_v30 = vld [vmem:[%s724_s0 + $0xe8] sm:$0xff]  ;;  %v538_v31 = vld [vmem:[%s724_s0 + $0xe0] sm:$0xff] }
  0x16   :  { %746 = vst [vmem:[#allocation10_spill] sm:$0xff] %v533_v30  ;;  %747 = vst [vmem:[#allocation11_spill] sm:$0xff] %v538_v31 }
  0x19   :  { %107 = vadd.xlane.f32.xlu1 %v106_v36  ;;  %104 = vadd.xlane.f32.xlu0 %v103_v37  ;;  %v69_v36 = vmul.f32 %v533_v30, %v533_v30  ;;  %v68_v37 = vmul.f32 %v538_v31, %v538_v31 }
  0x1d   :  { %113 = vadd.xlane.f32.xlu1 %v112_v42  ;;  %110 = vadd.xlane.f32.xlu0 %v109_v43  ;;  %v160_v42 = vsel %vm72_vm0, %v69_v36, 0.0  ;;  %v157_v43 = vsel %vm72_vm0, %v68_v37, 0.0 }
  0x21   :  { %119 = vadd.xlane.f32.xlu1 %v118_v48  ;;  %116 = vadd.xlane.f32.xlu0 %v115_v49  ;;  %v166_v48 = vsel %vm72_vm0, %v71_v44, 0.0  ;;  %v163_v49 = vsel %vm72_vm0, %v70_v45, 0.0 }
  0x25   :  { %125 = vadd.xlane.f32.xlu1 %v124_v54  ;;  %122 = vadd.xlane.f32.xlu0 %v121_v55 }
  0x29   :  { %131 = vadd.xlane.f32.xlu1 %v130_v60  ;;  %128 = vadd.xlane.f32.xlu0 %v127_v61 }
  0x2d   :  { %137 = vadd.xlane.f32.xlu1 %v136_v5  ;;  %134 = vadd.xlane.f32.xlu0 %v133_v7 }
  0x31   :  { %143 = vadd.xlane.f32.xlu1 %v142_v14  ;;  %140 = vadd.xlane.f32.xlu0 %v139_v15 }
  0x35   :  { %149 = vadd.xlane.f32.xlu1 %v148_v24  ;;  %146 = vadd.xlane.f32.xlu0 %v145_v25 }
  0x39   :  { %155 = vadd.xlane.f32.xlu1 %v154_v32  ;;  %152 = vadd.xlane.f32.xlu0 %v151_v33 }
  0x3d   :  { %161 = vadd.xlane.f32.xlu1 %v160_v42  ;;  %158 = vadd.xlane.f32.xlu0 %v157_v43 }
  0x41   :  { %167 = vadd.xlane.f32.xlu1 %v166_v48  ;;  %164 = vadd.xlane.f32.xlu0 %v163_v49 }
  0x8e   :  { %v81_v50 = vpop.xlane.xlu1 %80  ;;  %v75_v51 = vpop.xlane.xlu0 %74 }
  0x92   :  { %v84_v54 = vpop.xlane.xlu1 %83  ;;  %v78_v55 = vpop.xlane.xlu0 %77 }
  0x96   :  { %v90_v56 = vpop.xlane.xlu1 %89  ;;  %v87_v57 = vpop.xlane.xlu0 %86 }
  0x97   :  { %v170_v36 = vmax.f32 %v78_v55, %v90_v56  ;;  %v169_v37 = vmax.f32 %v75_v51, %v87_v57 }
  0x9a   :  { %v96_v60 = vpop.xlane.xlu1 %95  ;;  %v93_v61 = vpop.xlane.xlu0 %92 }
  0x9b   :  { %v172_v44 = vmax.f32 %v84_v54, %v96_v60  ;;  %v171_v45 = vmax.f32 %v81_v50, %v93_v61 }
  0x9e   :  { %v102_v62 = vpop.xlane.xlu1 %101  ;;  %v99_v63 = vpop.xlane.xlu0 %98 }
  0x9f   :  { %v174_v48 = vmax.f32 %v170_v36, %v102_v62  ;;  %v173_v49 = vmax.f32 %v169_v37, %v99_v63 }
  0xa2   :  { %v108_v5 = vpop.xlane.xlu1 %107  ;;  %v105_v7 = vpop.xlane.xlu0 %104 }
  0xa3   :  { %v176_v38 = vmax.f32 %v172_v44, %v108_v5  ;;  %v175_v39 = vmax.f32 %v171_v45, %v105_v7 }
  0xa6   :  { %v114_v10 = vpop.xlane.xlu1 %113  ;;  %v111_v11 = vpop.xlane.xlu0 %110 }
  0xa7   :  { %v178_v30 = vmax.f32 %v174_v48, %v114_v10  ;;  %v177_v31 = vmax.f32 %v173_v49, %v111_v11 }
  0xaa   :  { %v120_v14 = vpop.xlane.xlu1 %119  ;;  %v117_v15 = vpop.xlane.xlu0 %116 }
  0xab   :  { %v180_v12 = vmax.f32 %v176_v38, %v120_v14  ;;  %v179_v13 = vmax.f32 %v175_v39, %v117_v15 }
  0xae   :  { %v126_v18 = vpop.xlane.xlu1 %125  ;;  %v123_v19 = vpop.xlane.xlu0 %122 }
  0xaf   :  { %v182_v3 = vmax.f32 %v178_v30, %v126_v18  ;;  %v181_v4 = vmax.f32 %v177_v31, %v123_v19 }
  0xb2   :  { %v132_v24 = vpop.xlane.xlu1 %131  ;;  %v129_v25 = vpop.xlane.xlu0 %128 }
  0xb3   :  { %v184_v58 = vmax.f32 %v180_v12, %v132_v24  ;;  %v183_v59 = vmax.f32 %v179_v13, %v129_v25 }
  0xb6   :  { %v138_v26 = vpop.xlane.xlu1 %137  ;;  %v135_v27 = vpop.xlane.xlu0 %134 }
  0xb7   :  { %v186_v55 = vmax.f32 %v182_v3, %v138_v26  ;;  %v185_v51 = vmax.f32 %v181_v4, %v135_v27 }
  0xba   :  { %v144_v32 = vpop.xlane.xlu1 %143  ;;  %v141_v33 = vpop.xlane.xlu0 %140 }
  0xbb   :  { %v188_v54 = vmax.f32 %v184_v58, %v144_v32  ;;  %v187_v50 = vmax.f32 %v183_v59, %v141_v33 }
  0xbe   :  { %v150_v42 = vpop.xlane.xlu1 %149  ;;  %v147_v43 = vpop.xlane.xlu0 %146 }
  0xbf   :  { %v190_v60 = vmax.f32 %v186_v55, %v150_v42  ;;  %v189_v61 = vmax.f32 %v185_v51, %v147_v43  ;;  %v755_v55 = vld [vmem:[#allocation6_spill] sm:$0xff] }
  0xc2   :  { %v156_v20 = vpop.xlane.xlu1 %155  ;;  %v153_v21 = vpop.xlane.xlu0 %152 }
  0xc3   :  { %v192_v62 = vmax.f32 %v188_v54, %v156_v20  ;;  %v191_v63 = vmax.f32 %v187_v50, %v153_v21  ;;  %v757_v54 = vld [vmem:[#allocation8_spill] sm:$0xff] }
  0xc6   :  { %v162_v56 = vpop.xlane.xlu1 %161  ;;  %v159_v57 = vpop.xlane.xlu0 %158 }
  0xc7   :  { %v194_v5 = vmax.f32 %v190_v60, %v162_v56  ;;  %v193_v7 = vmax.f32 %v189_v61, %v159_v57  ;;  %v756_v56 = vld [vmem:[#allocation9_spill] sm:$0xff]  ;;  %v758_v60 = vld [vmem:[#allocation11_spill] sm:$0xff] }
  0xc9   :  { %v197_v30 = vmax.f32 %v193_v7, %v194_v5  ;;  %v760_v5 = vld [vmem:[#allocation13_spill] sm:$0xff] }
  0xca   :  { %v168_v10 = vpop.xlane.xlu1 %167  ;;  %v165_v11 = vpop.xlane.xlu0 %164 }
  0xcb   :  { %v196_v38 = vmax.f32 %v192_v62, %v168_v10  ;;  %v195_v39 = vmax.f32 %v191_v63, %v165_v11  ;;  %v759_v62 = vld [vmem:[#allocation10_spill] sm:$0xff]  ;;  %v761_v10 = vld [vmem:[#allocation12_spill] sm:$0xff] }
  0xcd   :  { %v198_v31 = vmax.f32 %v195_v39, %v196_v38 }
  0xcf   :  { %v199_v12 = vmax.f32 %v197_v30, %v198_v31 }
  0xd1   :  { %v200_v13 = vrot.slane %v199_v12, 4 }
  0xd3   :  { %v201_v3 = vmax.f32 %v199_v12, %v200_v13 }
  0xd5   :  { %v202_v4 = vrot.slane %v201_v3, 2 }
  0xd7   :  { %v203_v14 = vmax.f32 %v201_v3, %v202_v4 }
  0xd9   :  { %v204_v15 = vrot.slane %v203_v14, 1 }
  0xdb   :  { %v205_v58 = vmax.f32 %v203_v14, %v204_v15 }
  0xdd   :  { %288 = vpush %v205_v58 }
 0x10e   :  { %s289_s0 = spop %288 }
 0x10f   :  { %v207_v59 = vstv %s289_s0 }
 0x110   :  { %294 = vrsqrt.f32 %v207_v59  ;;  %vm210_vm1 = vcmp.eq.f32.partialorder %v207_v59, inf  ;;  %v213_v18 = vand.u32 2147483648, %v207_v59  ;;  %vm212_vm2 = vcmp.eq.f32.partialorder %v207_v59, 0.0 }
 0x11d   :  { %v295_v20 = vpop.eup %294 }
 0x11e   :  { %v209_v21 = vmul.f32 %v295_v20, %v207_v59 }
 0x120   :  { %v211_v19 = vsel %vm210_vm1, %v207_v59, %v209_v21 }
 0x121   :  { %v214_v24 = vsel %vm212_vm2, %v213_v18, %v211_v19 }
 0x122   :  { %290 = vpush %v214_v24 }
 0x153   :  { %s291_s12 = spop %290 }
 0x154   :  { %v216_v25 = vstv %s291_s12 }
 0x155   :  { %296 = vrcp.f32 %v216_v25 }
 0x162   :  { %v297_v26 = vpop.eup %296 }
 0x163   :  { %292 = vpush %v297_v26 }
 0x194   :  { %s293_s13 = spop %292 }
 0x195   :  { %v219_v27 = vstv %s293_s13 }
 0x196   :  { %v220_v32 = vmul.f32 %v219_v27, %v316_v1  ;;  %v221_v33 = vmul.f32 %v219_v27, %v332_v6  ;;  %v222_v36 = vmul.f32 %v219_v27, %v311_v0  ;;  %v223_v37 = vmul.f32 %v219_v27, %v321_v2 }
 0x197   :  { %v224_v42 = vmul.f32 %v219_v27, %v344_v9  ;;  %v225_v43 = vmul.f32 %v219_v27, %v339_v8  ;;  %v226_v44 = vmul.f32 %v219_v27, %v362_v17  ;;  %v227_v45 = vmul.f32 %v219_v27, %v357_v16 }
 0x198   :  { %v228_v48 = vmul.f32 %v219_v27, %v378_v23  ;;  %v229_v49 = vmul.f32 %v219_v27, %v373_v22  ;;  %v230_v1 = vmul.f32 %v219_v27, %v394_v29  ;;  %v231_v6 = vmul.f32 %v219_v27, %v389_v28  ;;  %252 = vst.msk [vmem:[%s725_s1] sm:$0xff] %vm72_vm0, %v220_v32  ;;  %v750_v28 = vld [vmem:[#allocation3_spill] sm:$0xff] }
 0x199   :  { %253 = vst.msk [vmem:[%s725_s1 + $0x8] sm:$0xff] %vm72_vm0, %v221_v33  ;;  %254 = vst.msk [vmem:[%s725_s1 + $0x10] sm:$0xff] %vm72_vm0, %v222_v36  ;;  %v232_v0 = vmul.f32 %v219_v27, %v410_v35  ;;  %v233_v2 = vmul.f32 %v219_v27, %v405_v34  ;;  %v234_v8 = vmul.f32 %v219_v27, %v426_v41  ;;  %v751_v34 = vld [vmem:[#allocation2_spill] sm:$0xff] }
 0x19a   :  { %255 = vst.msk [vmem:[%s725_s1 + $0x18] sm:$0xff] %vm72_vm0, %v223_v37  ;;  %v235_v9 = vmul.f32 %v219_v27, %v421_v40  ;;  %256 = vst.msk [vmem:[%s725_s1 + $0x20] sm:$0xff] %vm72_vm0, %v224_v42  ;;  %v236_v16 = vmul.f32 %v219_v27, %v442_v47  ;;  %v237_v17 = vmul.f32 %v219_v27, %v437_v46  ;;  %v752_v40 = vld [vmem:[#allocation5_spill] sm:$0xff]  ;;  %v753_v46 = vld [vmem:[#allocation4_spill] sm:$0xff] }
 0x19b   :  { %257 = vst.msk [vmem:[%s725_s1 + $0x28] sm:$0xff] %vm72_vm0, %v225_v43  ;;  %258 = vst.msk [vmem:[%s725_s1 + $0x30] sm:$0xff] %vm72_vm0, %v226_v44  ;;  %v238_v22 = vmul.f32 %v219_v27, %v458_v53  ;;  %v239_v23 = vmul.f32 %v219_v27, %v453_v52  ;;  %v240_v29 = vmul.f32 %v219_v27, %v750_v28  ;;  %v754_v52 = vld [vmem:[#allocation7_spill] sm:$0xff] }
 0x19c   :  { %259 = vst.msk [vmem:[%s725_s1 + $0x38] sm:$0xff] %vm72_vm0, %v227_v45  ;;  %260 = vst.msk [vmem:[%s725_s1 + $0x40] sm:$0xff] %vm72_vm0, %v228_v48  ;;  %v241_v35 = vmul.f32 %v219_v27, %v751_v34  ;;  %v242_v41 = vmul.f32 %v219_v27, %v752_v40  ;;  %v243_v47 = vmul.f32 %v219_v27, %v753_v46 }
 0x19d   :  { %261 = vst.msk [vmem:[%s725_s1 + $0x48] sm:$0xff] %vm72_vm0, %v229_v49  ;;  %262 = vst.msk [vmem:[%s725_s1 + $0x50] sm:$0xff] %vm72_vm0, %v230_v1  ;;  %v244_v53 = vmul.f32 %v219_v27, %v754_v52  ;;  %v245_v51 = vmul.f32 %v219_v27, %v755_v55  ;;  %v246_v57 = vmul.f32 %v219_v27, %v756_v56 }
 0x19e   :  { %263 = vst.msk [vmem:[%s725_s1 + $0x58] sm:$0xff] %vm72_vm0, %v231_v6  ;;  %264 = vst.msk [vmem:[%s725_s1 + $0x60] sm:$0xff] %vm72_vm0, %v232_v0  ;;  %v247_v50 = vmul.f32 %v219_v27, %v757_v54  ;;  %v248_v61 = vmul.f32 %v219_v27, %v758_v60  ;;  %v249_v63 = vmul.f32 %v219_v27, %v759_v62 }
 0x19f   :  { %265 = vst.msk [vmem:[%s725_s1 + $0x68] sm:$0xff] %vm72_vm0, %v233_v2  ;;  %266 = vst.msk [vmem:[%s725_s1 + $0x70] sm:$0xff] %vm72_vm0, %v234_v8  ;;  %v250_v7 = vmul.f32 %v219_v27, %v760_v5  ;;  %v251_v11 = vmul.f32 %v219_v27, %v761_v10 }
 0x1a0   :  { %267 = vst.msk [vmem:[%s725_s1 + $0x78] sm:$0xff] %vm72_vm0, %v235_v9  ;;  %268 = vst.msk [vmem:[%s725_s1 + $0x80] sm:$0xff] %vm72_vm0, %v236_v16 }
 0x1a1   :  { %269 = vst.msk [vmem:[%s725_s1 + $0x88] sm:$0xff] %vm72_vm0, %v237_v17  ;;  %270 = vst.msk [vmem:[%s725_s1 + $0x90] sm:$0xff] %vm72_vm0, %v238_v22 }
 0x1a2   :  { %271 = vst.msk [vmem:[%s725_s1 + $0x98] sm:$0xff] %vm72_vm0, %v239_v23  ;;  %272 = vst.msk [vmem:[%s725_s1 + $0xa0] sm:$0xff] %vm72_vm0, %v240_v29 }
 0x1a3   :  { %273 = vst.msk [vmem:[%s725_s1 + $0xa8] sm:$0xff] %vm72_vm0, %v241_v35  ;;  %274 = vst.msk [vmem:[%s725_s1 + $0xb0] sm:$0xff] %vm72_vm0, %v242_v41 }
 0x1a4   :  { %275 = vst.msk [vmem:[%s725_s1 + $0xb8] sm:$0xff] %vm72_vm0, %v243_v47  ;;  %276 = vst.msk [vmem:[%s725_s1 + $0xc0] sm:$0xff] %vm72_vm0, %v244_v53 }
 0x1a5   :  { %277 = vst.msk [vmem:[%s725_s1 + $0xc8] sm:$0xff] %vm72_vm0, %v245_v51  ;;  %278 = vst.msk [vmem:[%s725_s1 + $0xd0] sm:$0xff] %vm72_vm0, %v246_v57 }
 0x1a6   :  { %279 = vst.msk [vmem:[%s725_s1 + $0xd8] sm:$0xff] %vm72_vm0, %v247_v50  ;;  %280 = vst.msk [vmem:[%s725_s1 + $0xe0] sm:$0xff] %vm72_vm0, %v248_v61 }
 0x1a7   :  { %281 = vst.msk [vmem:[%s725_s1 + $0xe8] sm:$0xff] %vm72_vm0, %v249_v63  ;;  %282 = vst.msk [vmem:[%s725_s1 + $0xf0] sm:$0xff] %vm72_vm0, %v250_v7 }
 0x1a8   :  { %283 = vst.msk [vmem:[%s725_s1 + $0xf8] sm:$0xff] %vm72_vm0, %v251_v11 }

</bundles_post_ra>
